<compile_context>
chip_gen: v7x
topology: tpu7x:2x2x1
jax: 0.10.0
libtpu: 0.0.40
codegen_flags: <defaults>
</compile_context>

<pallas_src>
import jax
import jax.numpy as jnp
from jax.experimental import pallas as pl
from jax.experimental.pallas import tpu as pltpu


def _attention_kernel(x_ref, w1_ref, b1_ref, w2_ref, b2_ref, ctx_ref, attn_ref):
    TB, S, H = x_ref.shape
    H2 = w1_ref.shape[1]

    x = x_ref[...]                                            # (TB, S, H)

    # First Linear + ReLU: fold (TB, S) into the matmul M dimension.
    h = jnp.dot(x.reshape(TB * S, H), w1_ref[...],
                preferred_element_type=jnp.float32)
    h = jnp.maximum(h + b1_ref[...], 0.0)                     # (TB*S, H2)

    # Second Linear has output width 1 -> VPU multiply + lane reduction
    # (avoids an N=1 MXU matmul that would use 1 of 128/256 result lanes).
    w2_row = w2_ref[...]                                      # (1, H2)
    scores = jnp.sum(h.reshape(TB, S, H2) * w2_row, axis=-1) + b2_ref[0]  # (TB, S)

    # Softmax over the sequence (lane) axis, per batch row.
    m = jnp.max(scores, axis=-1, keepdims=True)
    e = jnp.exp(scores - m)
    denom = jnp.sum(e, axis=-1, keepdims=True)
    attn = e * pl.reciprocal(denom, approx=True)              # (TB, S)

    # Weighted sum over the sequence axis -> (TB, H).
    ctx = jnp.sum(attn[:, :, None] * x, axis=1)

    ctx_ref[...] = ctx.astype(ctx_ref.dtype)                  # (TB, H) slab store
    attn_ref[...] = attn.astype(attn_ref.dtype)               # (TB, S) lane-dense


def attention_module(x, w1, b1, w2, b2, *, tb=8):
    """x: (B, S, H). Returns (context (B, H), attn_weights (B, S, 1)).

    tb = batch rows per grid step.  For large S*H, size tb so that
    2 * tb*S*H*4B (double-buffered x) + H*H2*4B (W1) stays well inside the
    scoped VMEM limit (remember v7x has 64 MiB VMEM vs 128 MiB on v5e/v6e).
    """
    B, S, H = x.shape
    H2 = w1.shape[1]

    # Pad batch up to a multiple of tb (padded rows compute a harmless
    # uniform softmax over zeros and are sliced away afterwards).
    B_pad = ((B + tb - 1) // tb) * tb
    if B_pad != B:
        x = jnp.pad(x, ((0, B_pad - B), (0, 0), (0, 0)))

    b1_2d = b1.reshape(1, H2)
    w2_row = w2.reshape(1, H2)      # (H2, 1) -> (1, H2), lane-aligned row
    b2_1d = b2.reshape(1,)          # scalar via SMEM

    grid = (B_pad // tb,)

    ctx_pad, attn_pad = pl.pallas_call(
        _attention_kernel,
        out_shape=(
            jax.ShapeDtypeStruct((B_pad, H), x.dtype),
            jax.ShapeDtypeStruct((B_pad, S), x.dtype),
        ),
        grid_spec=pltpu.PrefetchScalarGridSpec(
            num_scalar_prefetch=0,
            grid=grid,
            in_specs=[
                pl.BlockSpec((tb, S, H), lambda b: (b, 0, 0)),       # x block
                pl.BlockSpec((H, H2), lambda b: (0, 0)),             # W1 (full)
                pl.BlockSpec((1, H2), lambda b: (0, 0)),             # b1
                pl.BlockSpec((1, H2), lambda b: (0, 0)),             # W2 as row
                pl.BlockSpec(memory_space=pltpu.MemorySpace.SMEM),   # b2 scalar
            ],
            out_specs=[
                pl.BlockSpec((tb, H), lambda b: (b, 0)),             # context
                pl.BlockSpec((tb, S), lambda b: (b, 0)),             # attn (lane-dense)
            ],
        ),
        compiler_params=pltpu.CompilerParams(
            dimension_semantics=("parallel",)),
    )(x, w1, b1_2d, w2_row, b2_1d)

    ctx = ctx_pad[:B]
    attn = attn_pad[:B].reshape(B, S, 1)
    return ctx, attn


def attention_module_ref(x, w1, b1, w2, b2):
    """Plain-JAX reference mirroring the PyTorch forward."""
    h = jnp.maximum(jnp.einsum("bsh,hk->bsk", x, w1) + b1, 0.0)
    scores = jnp.einsum("bsk,ko->bso", h, w2) + b2            # (B, S, 1)
    attn = jax.nn.softmax(scores, axis=1)
    ctx = jnp.sum(attn * x, axis=1)                           # (B, H)
    return ctx, attn


if __name__ == "__main__":
    S, H = 8, 32
    H2 = H // 2

    key = jax.random.PRNGKey(0)
    k_x, k_w1, k_b1, k_w2, k_b2 = jax.random.split(key, 5)

    # Deterministic parameters (shapes from nn.Linear(H, H//2), nn.Linear(H//2, 1)).
    w1 = jax.random.normal(k_w1, (H, H2), dtype=jnp.float32) * 0.1
    b1 = jax.random.normal(k_b1, (H2,), dtype=jnp.float32) * 0.1
    w2 = jax.random.normal(k_w2, (H2, 1), dtype=jnp.float32) * 0.1
    b2 = jax.random.normal(k_b2, (1,), dtype=jnp.float32) * 0.1

    # B=2 exercises batch padding (single grid step); B=12 exercises padding
    # plus multiple "parallel" grid steps.
    for B in (2, 12):
        x = jax.random.normal(jax.random.fold_in(k_x, B), (B, S, H),
                              dtype=jnp.float32)

        ctx, attn = attention_module(x, w1, b1, w2, b2)
        jax.block_until_ready((ctx, attn))

        ctx_ref, attn_ref = attention_module_ref(x, w1, b1, w2, b2)
        assert ctx.shape == (B, H) and attn.shape == (B, S, 1)
        # approx=True softmax reciprocal -> ~1e-3-level agreement with the
        # exact reference.
        assert jnp.allclose(ctx, ctx_ref, atol=3e-3, rtol=3e-3)
        assert jnp.allclose(attn, attn_ref, atol=3e-3, rtol=3e-3)

    print("KERNEL_OK")
</pallas_src>

<mosaic_0001>
module attributes {stable_mosaic.version = 11 : i64} {
  func.func @_attention_kernel(%arg0: i32, %arg1: memref<8x8x32xf32, #tpu.memory_space<vmem>>, %arg2: memref<32x16xf32, #tpu.memory_space<vmem>>, %arg3: memref<1x16xf32, #tpu.memory_space<vmem>>, %arg4: memref<1x16xf32, #tpu.memory_space<vmem>>, %arg5: memref<1xf32, #tpu.memory_space<smem>>, %arg6: memref<8x32xf32, #tpu.memory_space<vmem>>, %arg7: memref<8x8xf32, #tpu.memory_space<vmem>>) attributes {dimension_semantics = [#tpu.dimension_semantics<parallel>], iteration_bounds = array<i64: 1>, scalar_prefetch = 0 : i64, scratch_operands = 0 : i64, tpu.core_type = #tpu.core_type<tc>, window_params = [{transform_indices = @transform_0, window_bounds = array<i64: 8, 8, 32>}, {pipeline_mode = #tpu.pipeline_mode<synchronous>, transform_indices = @transform_1, window_bounds = array<i64: 32, 16>}, {pipeline_mode = #tpu.pipeline_mode<synchronous>, transform_indices = @transform_2, window_bounds = array<i64: 1, 16>}, {pipeline_mode = #tpu.pipeline_mode<synchronous>, transform_indices = @transform_3, window_bounds = array<i64: 1, 16>}, {transform_indices = @transform_4, window_bounds = array<i64: 1>}, {transform_indices = @transform_5, window_bounds = array<i64: 8, 32>}, {transform_indices = @transform_6, window_bounds = array<i64: 8, 8>}]} {
    %c0 = arith.constant 0 : index
    %c0_0 = arith.constant 0 : index
    %c0_1 = arith.constant 0 : index
    %0 = vector.load %arg1[%c0, %c0_0, %c0_1] : memref<8x8x32xf32, #tpu.memory_space<vmem>>, vector<8x8x32xf32>
    %1 = vector.shape_cast %0 : vector<8x8x32xf32> to vector<64x32xf32>
    %c0_2 = arith.constant 0 : index
    %c0_3 = arith.constant 0 : index
    %2 = vector.load %arg2[%c0_2, %c0_3] : memref<32x16xf32, #tpu.memory_space<vmem>>, vector<32x16xf32>
    %cst = arith.constant dense<0.000000e+00> : vector<64x16xf32>
    %3 = tpu.matmul %1, %2, %cst {dimension_numbers = #tpu.dot_dimension_numbers<[1], [0], [0], [1], [0, 0, 1, 1], [], []>} : vector<64x32xf32>, vector<32x16xf32>, vector<64x16xf32> -> vector<64x16xf32>
    %c0_4 = arith.constant 0 : index
    %c0_5 = arith.constant 0 : index
    %4 = vector.load %arg3[%c0_4, %c0_5] : memref<1x16xf32, #tpu.memory_space<vmem>>, vector<1x16xf32>
    %5 = vector.broadcast %4 : vector<1x16xf32> to vector<64x16xf32>
    %6 = arith.addf %3, %5 : vector<64x16xf32>
    %cst_6 = arith.constant 0.000000e+00 : f32
    %7 = vector.broadcast %cst_6 : f32 to vector<64x16xf32>
    %8 = arith.maximumf %6, %7 : vector<64x16xf32>
    %c0_7 = arith.constant 0 : index
    %c0_8 = arith.constant 0 : index
    %9 = vector.load %arg4[%c0_7, %c0_8] : memref<1x16xf32, #tpu.memory_space<vmem>>, vector<1x16xf32>
    %10 = vector.shape_cast %8 : vector<64x16xf32> to vector<8x8x16xf32>
    %11 = vector.shape_cast %9 : vector<1x16xf32> to vector<1x1x16xf32>
    %12 = vector.broadcast %11 : vector<1x1x16xf32> to vector<8x8x16xf32>
    %13 = arith.mulf %10, %12 : vector<8x8x16xf32>
    %cst_9 = arith.constant dense<0.000000e+00> : vector<8x8xf32>
    %14 = vector.multi_reduction <add>, %13, %cst_9 [2] : vector<8x8x16xf32> to vector<8x8xf32>
    %c0_10 = arith.constant 0 : index
    %15 = memref.load %arg5[%c0_10] : memref<1xf32, #tpu.memory_space<smem>>
    %16 = vector.broadcast %15 : f32 to vector<8x8xf32>
    %17 = arith.addf %14, %16 : vector<8x8xf32>
    %cst_11 = arith.constant dense<0xFF800000> : vector<8xf32>
    %18 = vector.multi_reduction <maximumf>, %17, %cst_11 [1] : vector<8x8xf32> to vector<8xf32>
    %19 = vector.shape_cast %18 : vector<8xf32> to vector<8x1xf32>
    %20 = vector.broadcast %19 : vector<8x1xf32> to vector<8x8xf32>
    %21 = arith.subf %17, %20 : vector<8x8xf32>
    %22 = math.exp %21 : vector<8x8xf32>
    %cst_12 = arith.constant dense<0.000000e+00> : vector<8xf32>
    %23 = vector.multi_reduction <add>, %22, %cst_12 [1] : vector<8x8xf32> to vector<8xf32>
    %24 = vector.shape_cast %23 : vector<8xf32> to vector<8x1xf32>
    %25 = tpu.reciprocal %24 {approx = true} : vector<8x1xf32> -> vector<8x1xf32>
    %26 = vector.broadcast %25 : vector<8x1xf32> to vector<8x8xf32>
    %27 = arith.mulf %22, %26 : vector<8x8xf32>
    %28 = vector.shape_cast %27 : vector<8x8xf32> to vector<8x8x1xf32>
    %29 = vector.broadcast %28 : vector<8x8x1xf32> to vector<8x8x32xf32>
    %30 = arith.mulf %29, %0 : vector<8x8x32xf32>
    %cst_13 = arith.constant dense<0.000000e+00> : vector<8x32xf32>
    %31 = vector.multi_reduction <add>, %30, %cst_13 [1] : vector<8x8x32xf32> to vector<8x32xf32>
    %c0_14 = arith.constant 0 : index
    %c0_15 = arith.constant 0 : index
    %32 = vector.load %arg6[%c0_14, %c0_15] : memref<8x32xf32, #tpu.memory_space<vmem>>, vector<8x32xf32>
    tpu.vector_store %arg6[%c0_14, %c0_15], %31 {strides = array<i32>} : memref<8x32xf32, #tpu.memory_space<vmem>>, vector<8x32xf32>,
    %c0_16 = arith.constant 0 : index
    %c0_17 = arith.constant 0 : index
    %33 = vector.load %arg7[%c0_16, %c0_17] : memref<8x8xf32, #tpu.memory_space<vmem>>, vector<8x8xf32>
    tpu.vector_store %arg7[%c0_16, %c0_17], %27 {strides = array<i32>} : memref<8x8xf32, #tpu.memory_space<vmem>>, vector<8x8xf32>,
    return
  }
  func.func @transform_0(%arg0: i32) -> (i32, i32, i32) {
    %c0_i32 = arith.constant 0 : i32
    %c0_i32_0 = arith.constant 0 : i32
    %c0_i32_1 = arith.constant 0 : i32
    return %arg0, %c0_i32, %c0_i32_0 : i32, i32, i32
  }
  func.func @transform_1(%arg0: i32) -> (i32, i32) {
    %c0_i32 = arith.constant 0 : i32
    %c0_i32_0 = arith.constant 0 : i32
    %c0_i32_1 = arith.constant 0 : i32
    return %c0_i32, %c0_i32_0 : i32, i32
  }
  func.func @transform_2(%arg0: i32) -> (i32, i32) {
    %c0_i32 = arith.constant 0 : i32
    %c0_i32_0 = arith.constant 0 : i32
    %c0_i32_1 = arith.constant 0 : i32
    return %c0_i32, %c0_i32_0 : i32, i32
  }
  func.func @transform_3(%arg0: i32) -> (i32, i32) {
    %c0_i32 = arith.constant 0 : i32
    %c0_i32_0 = arith.constant 0 : i32
    %c0_i32_1 = arith.constant 0 : i32
    return %c0_i32, %c0_i32_0 : i32, i32
  }
  func.func @transform_4(%arg0: i32) -> i32 {
    %c0_i32 = arith.constant 0 : i32
    %c0_i32_0 = arith.constant 0 : i32
    return %c0_i32 : i32
  }
  func.func @transform_5(%arg0: i32) -> (i32, i32) {
    %c0_i32 = arith.constant 0 : i32
    %c0_i32_0 = arith.constant 0 : i32
    return %arg0, %c0_i32 : i32, i32
  }
  func.func @transform_6(%arg0: i32) -> (i32, i32) {
    %c0_i32 = arith.constant 0 : i32
    %c0_i32_0 = arith.constant 0 : i32
    return %arg0, %c0_i32 : i32, i32
  }
}

</mosaic_0001>

<bundles_post_ra>
// kernel: tpu_custom_call.1
= control target key start
LH: loop header
LB: loop body
LE: loop exit
PB: predicated region body
PF: predicated region fallthrough
CT: control target
= control target key end

     0   :  { %13 = vsyncpa [#allocation4], 0  ;;  %s1107_s0 = inlined_call_operand.hbm [shape: f32[8,8,32], index: 0, kind: input, shape index: {}]   ;;  %s1108_s1 = inlined_call_operand.vmem [shape: f32[32,16], index: 1, kind: input, shape index: {}]   ;;  %s1109_s2 = inlined_call_operand.vmem [shape: f32[1,16], index: 2, kind: input, shape index: {}]   ;;  %s1110_s3 = inlined_call_operand.vmem [shape: f32[1,16], index: 3, kind: input, shape index: {}]   ;;  %s1111_s4 = inlined_call_operand.<no memory space> [shape: f32[1], index: 4, kind: input, shape index: {}]   ;;  %s1112_s5 = inlined_call_operand.hbm [shape: f32[8,32], index: 5, kind: output, shape index: {0}]   ;;  %s1113_s6 = inlined_call_operand.hbm [shape: f32[8,8], index: 6, kind: output, shape index: {1}]  }
   0x1   :  { %14 = vsyncpa [#allocation5], 0 }
   0x2   :  { %15 = vsyncpa [#allocation8], 0  ;;  %s840_s21 = smov [#allocation3]   ;;  %s768_s25 = scalar_lea.hbm %s1107_s0, 1024 }
   0x3   :  { %s21_s22 = sshll.u32 %s840_s21, 4  ;;  %p769_p0 = scmp.ne.s32.totalorder %s1107_s0, %s768_s25  ;;  %s22_s22 = int_to_ptr.vmem [resolvable:$true] %s21_s22 }
   0x4   :  { %p772_p1 = scmp.lt.u32.totalorder %s768_s25, %s1107_s0 }
   0x6   :  { %p774_p2 = pnand %p772_p1, %p769_p0 }
   0x8   :  { %777 = shalt.err (!%p774_p2)
}
   0x9   :  { %s778_s30 = scalar_lea.vmem %s22_s22, 1024  ;;  %p783_p4 = scmp.lt.s32.totalorder %s22_s22, %s22_s22 }
   0xa   :  { %p779_p3 = scmp.ne.s32.totalorder %s22_s22, %s778_s30  ;;  %p784_p5 = scmp.lt.s32.totalorder %s778_s30, %s778_s30 }
   0xc   :  { %p785_p6 = por %p784_p5, %p783_p4 }
   0xe   :  { %p786_p7 = pnand %p785_p6, %p779_p3 }
  0x10   :  { %789 = shalt.err (!%p786_p7)
}
  0x11   :  { %s841_s7 = smov 128   ;;  %s842_s8 = smov 8  }
  0x12   :  { %27 = dma.hbm_to_vmem [thread:$0]  %s1107_s0, 1024, %s22_s22, [#allocation4], %s841_s7, %s841_s7, %s842_s8  }
  0x13   :  { %834 = dma.done.wait [#allocation4], 1024  }
  0x14   :  { %835 = vsyncadd [#allocation4], 4294966272  ;;  %vm58_vm0 = vcmask 261120   ;;  %v47_v0 = vld [vmem:[%s1108_s1] sm:$0xff]  ;;  %v48_v1 = vld [vmem:[%s1108_s1 + $0x8] sm:$0xff]  ;;  %vm211_vm1 = vcmask 130048   ;;  %v254_v56 = vlaneseq  ;;  %v237_v60 = vstv %s1111_s4 }
  0x15   :  { %v49_v2 = vld [vmem:[%s1108_s1 + $0x10] sm:$0xff]  ;;  %v730_v3 = vpack.c.bf16 %v48_v1, %v47_v0  ;;  %v50_v4 = vld [vmem:[%s1108_s1 + $0x18] sm:$0xff]  ;;  %v905_v5 = vld [vmem:[#allocation3] sm:$0xff]  ;;  %vm288_vm2 = vcmask 1041409   ;;  %vm290_vm3 = vcmask 1042434   ;;  %vm292_vm4 = vcmask 1043459  }
  0x16   :  { %v734_v6 = vpack.c.bf16 %v50_v4, %v49_v2  ;;  %718 = vmatprep.mubr.msk.f32.mxu0 %vm58_vm0, %v905_v5  ;;  %v909_v7 = vld [vmem:[#allocation3 + $0x20] sm:$0xff]  ;;  %v913_v8 = vld [vmem:[#allocation3 + $0x8] sm:$0xff]  ;;  %v917_v10 = vld [vmem:[#allocation3 + $0x10] sm:$0xff]  ;;  %v255_v58 = vand.u32 127, %v254_v56  ;;  %v951_v59 = vshrl.u32 %v254_v56, 7  ;;  %vm294_vm5 = vcmask 1044484  }
  0x17   :  { %731 = vmatprep.subr.bf16.mxu0 %v730_v3  ;;  %738 = vmatprep.subr.bf16.mxu1 %v730_v3  ;;  %v915_v9 = vld [vmem:[#allocation3 + $0x28] sm:$0xff]  ;;  %v919_v11 = vld [vmem:[#allocation3 + $0x30] sm:$0xff]  ;;  %v927_v12 = vld [vmem:[#allocation3 + $0x18] sm:$0xff]  ;;  %vm296_vm6 = vcmask 1045509   ;;  %vm298_vm7 = vcmask 1046534   ;;  %vm300_vm8 = vcmask 1047559  }
  0x18   :  { %733 = vmatpush3.bf16.msra.mxu0 %v730_v3  ;;  %740 = vmatpush3.bf16.msra.mxu1 %v730_v3  ;;  %v931_v13 = vld [vmem:[#allocation3 + $0x38] sm:$0xff]  ;;  %v688_v14 = vld [vmem:[%s1109_s2] ss:$0 sm:$0xff]  ;;  %v957_v0 = vsub.s32 %v255_v58, %v951_v59  ;;  %vm303_vm9 = vcmask 64512   ;;  %s844_s4 = smov [#allocation7]  }
  0x19   :  { %735 = vmatprep.subr.bf16.mxu0 %v734_v6  ;;  %739 = vmatprep.subr.bf16.mxu1 %v734_v6  ;;  %v697_v21 = vld [vmem:[%s1110_s3] ss:$0 sm:$0xff]  ;;  %s675_s21 = sshll.u32 %s844_s4, 4  ;;  %s676_s21 = int_to_ptr.vmem [resolvable:$true] %s675_s21 }
  0x1a   :  { %724 = vmatprep.mubr.msk.f32.mxu1 %vm58_vm0, %v909_v7  ;;  %s790_s22 = scalar_lea.vmem %s676_s21, 128  ;;  %p795_p9 = scmp.lt.s32.totalorder %s676_s21, %s676_s21 }
  0x1b   :  { %p791_p8 = scmp.ne.s32.totalorder %s676_s21, %s790_s22  ;;  %p796_p10 = scmp.lt.s32.totalorder %s790_s22, %s790_s22 }
  0x1c   :  { %737 = vmatpush3.bf16.msra.mxu0 %v734_v6  ;;  %741 = vmatpush3.bf16.msra.mxu1 %v734_v6 }
  0x1d   :  { %p797_p11 = por %p796_p10, %p795_p9 }
  0x1f   :  { %719 = vmatmul.mubr.msk.f32.vlgmr.msra.gmra.mrb[0].mxu0 %vm58_vm0, %v913_v8  ;;  %725 = vmatmul.mubr.msk.f32.vlgmr.msra.gmra.mrb[0].mxu1 %vm58_vm0, %v915_v9  ;;  %p798_p12 = pnand %p797_p11, %p791_p8 }
  0x20   :  { %721 = vmatprep.mubr.msk.f32.mxu0 %vm58_vm0, %v917_v10  ;;  %727 = vmatprep.mubr.msk.f32.mxu1 %vm58_vm0, %v919_v11 }
  0x23   :  { %722 = vmatmul.mubr.msk.f32.gmra.mrb[2].mxu0 %vm58_vm0, %v927_v12  ;;  %728 = vmatmul.mubr.msk.f32.gmra.mrb[2].mxu1 %vm58_vm0, %v931_v13 }
  0xf2   :  { %v720_v15 = vpop.f32.mrb[0].mxu0  ;;  %v726_v16 = vpop.f32.mrb[0].mxu1 }
  0xf3   :  { %v155_v17 = vadd.f32 %v720_v15, %v688_v14  ;;  %v149_v18 = vpop.f32.mrb[1].mxu0  ;;  %v169_v19 = vpop.f32.mrb[1].mxu1  ;;  %v175_v33 = vadd.f32 %v726_v16, %v688_v14 }
  0xf4   :  { %v150_v20 = vadd.f32 %v688_v14, %v149_v18  ;;  %v170_v22 = vadd.f32 %v688_v14, %v169_v19 }
  0xf5   :  { %v189_v23 = vmax.f32 %v155_v17, 0.0  ;;  %v193_v42 = vmax.f32 %v175_v33, 0.0 }
  0xf6   :  { %v188_v24 = vmax.f32 %v150_v20, 0.0  ;;  %v723_v25 = vpop.f32.mrb[2].mxu0  ;;  %v729_v26 = vpop.f32.mrb[2].mxu1  ;;  %v192_v30 = vmax.f32 %v170_v22, 0.0 }
  0xf7   :  { %v165_v27 = vadd.f32 %v723_v25, %v688_v14  ;;  %v159_v28 = vpop.f32.mrb[3].mxu0  ;;  %v204_v29 = vmul.f32 %v697_v21, %v189_v23  ;;  %v179_v31 = vpop.f32.mrb[3].mxu1  ;;  %v185_v43 = vadd.f32 %v729_v26, %v688_v14  ;;  %v208_v51 = vmul.f32 %v697_v21, %v193_v42 }
  0xf8   :  { %v160_v32 = vadd.f32 %v688_v14, %v159_v28  ;;  %v180_v34 = vadd.f32 %v688_v14, %v179_v31  ;;  %v203_v37 = vmul.f32 %v697_v21, %v188_v24  ;;  %v207_v41 = vmul.f32 %v697_v21, %v192_v30 }
  0xf9   :  { %v191_v35 = vmax.f32 %v165_v27, 0.0  ;;  %v215_v36 = vsel %vm211_vm1, %v204_v29, 0.0  ;;  %v195_v49 = vmax.f32 %v185_v43, 0.0  ;;  %v227_v53 = vsel %vm211_vm1, %v208_v51, 0.0 }
  0xfa   :  { %v190_v38 = vmax.f32 %v160_v32, 0.0  ;;  %216 = vadd.xlane.f32.xlu0 %v215_v36  ;;  %v194_v40 = vmax.f32 %v180_v34, 0.0  ;;  %v212_v45 = vsel %vm211_vm1, %v203_v37, 0.0  ;;  %v224_v47 = vsel %vm211_vm1, %v207_v41, 0.0 }
  0xfb   :  { %v206_v39 = vmul.f32 %v697_v21, %v191_v35  ;;  %v210_v54 = vmul.f32 %v697_v21, %v195_v49  ;;  %v843_v37 = vmov 0   ;;  %v322_v41 = vsub.s32 3, %v951_v59 }
  0xfc   :  { %v205_v46 = vmul.f32 %v697_v21, %v190_v38  ;;  %v209_v48 = vmul.f32 %v697_v21, %v194_v40  ;;  %749 = vset.pattern.permute.xlu0 %v843_v37  ;;  %748 = vset.pattern.permute.xlu1 %v843_v37  ;;  %v310_v38 = vsub.s32 0, %v951_v59  ;;  %v318_v40 = vsub.s32 2, %v951_v59 }
  0xfd   :  { %v221_v44 = vsel %vm211_vm1, %v206_v39, 0.0  ;;  %v233_v55 = vsel %vm211_vm1, %v210_v54, 0.0  ;;  %v314_v39 = vsub.s32 1, %v951_v59 }
  0xfe   :  { %222 = vadd.xlane.f32.xlu1 %v221_v44  ;;  %213 = vadd.xlane.f32.xlu0 %v212_v45  ;;  %v218_v50 = vsel %vm211_vm1, %v205_v46, 0.0  ;;  %v230_v52 = vsel %vm211_vm1, %v209_v48, 0.0  ;;  %v326_v46 = vsub.s32 4, %v951_v59 }
 0x102   :  { %219 = vadd.xlane.f32.xlu1 %v218_v50  ;;  %225 = vadd.xlane.f32.xlu0 %v224_v47 }
 0x106   :  { %228 = vadd.xlane.f32.xlu1 %v227_v53  ;;  %231 = vadd.xlane.f32.xlu0 %v230_v52  ;;  %v330_v53 = vsub.s32 5, %v951_v59 }
 0x10a   :  { %234 = vadd.xlane.f32.xlu1 %v233_v55 }
 0x187   :  { %v217_v57 = vpop.xlane.xlu0 %216 }
 0x188   :  { %v239_v1 = vadd.f32 %v237_v60, %v217_v57  ;;  %v334_v57 = vsub.s32 6, %v951_v59 }
 0x18a   :  { %v263_v16 = vrot.slane %v239_v1, %v957_v0 }
 0x18b   :  { %v223_v61 = vpop.xlane.xlu1 %222  ;;  %v214_v62 = vpop.xlane.xlu0 %213 }
 0x18c   :  { %v238_v63 = vadd.f32 %v237_v60, %v214_v62  ;;  %v959_v2 = vadd.f32 %v237_v60, %v223_v61  ;;  %v338_v62 = vsub.s32 7, %v951_v59 }
 0x18e   :  { %v259_v3 = vrot.slane %v238_v63, %v957_v0  ;;  %v271_v19 = vrot.slane %v959_v2, %v957_v0 }
 0x18f   :  { %v220_v4 = vpop.xlane.xlu1 %219  ;;  %v226_v6 = vpop.xlane.xlu0 %225 }
 0x190   :  { %v240_v14 = vadd.f32 %v237_v60, %v220_v4  ;;  %v962_v15 = vadd.f32 %v237_v60, %v226_v6  ;;  %v289_v20 = vsel %vm288_vm2, %v263_v16, %v259_v3 }
 0x192   :  { %v267_v17 = vrot.slane %v240_v14, %v957_v0  ;;  %v275_v18 = vrot.slane %v962_v15, %v957_v0 }
 0x193   :  { %v229_v21 = vpop.xlane.xlu1 %228  ;;  %v232_v22 = vpop.xlane.xlu0 %231 }
 0x194   :  { %v291_v23 = vsel %vm290_vm3, %v267_v17, %v289_v20  ;;  %v243_v24 = vadd.f32 %v237_v60, %v229_v21  ;;  %v972_v25 = vadd.f32 %v237_v60, %v232_v22 }
 0x195   :  { %v293_v26 = vsel %vm292_vm4, %v271_v19, %v291_v23 }
 0x196   :  { %v295_v27 = vsel %vm294_vm5, %v275_v18, %v293_v26  ;;  %v279_v28 = vrot.slane %v243_v24, %v957_v0  ;;  %v283_v29 = vrot.slane %v972_v25, %v957_v0 }
 0x197   :  { %v235_v30 = vpop.xlane.xlu1 %234 }
 0x198   :  { %v245_v31 = vadd.f32 %v237_v60, %v235_v30  ;;  %v297_v32 = vsel %vm296_vm6, %v279_v28, %v295_v27 }
 0x199   :  { %v299_v34 = vsel %vm298_vm7, %v283_v29, %v297_v32 }
 0x19a   :  { %v287_v33 = vrot.slane %v245_v31, %v957_v0 }
 0x19c   :  { %v301_v35 = vsel %vm300_vm8, %v287_v33, %v299_v34 }
 0x19d   :  { %v304_v36 = vsel %vm303_vm9, %v301_v35, -inf }
 0x19e   :  { %305 = vmax.xlane.f32.xlu0 %v304_v36 }
 0x22b   :  { %v306_v42 = vpop.xlane.xlu0 %305 }
 0x22c   :  { %v311_v43 = vrot.slane %v306_v42, %v310_v38  ;;  %v315_v44 = vrot.slane %v306_v42, %v314_v39  ;;  %v319_v45 = vrot.slane %v306_v42, %v318_v40  ;;  %v323_v47 = vrot.slane %v306_v42, %v322_v41 }
 0x22d   :  { %v327_v54 = vrot.slane %v306_v42, %v326_v46  ;;  %v331_v58 = vrot.slane %v306_v42, %v330_v53  ;;  %v339_v6 = vrot.slane %v306_v42, %v338_v62 }
 0x22e   :  { %v348_v48 = vsub.f32 %v238_v63, %v311_v43  ;;  %v349_v49 = vsub.f32 %v239_v1, %v315_v44  ;;  %v350_v50 = vsub.f32 %v240_v14, %v319_v45  ;;  %v351_v55 = vsub.f32 %v959_v2, %v323_v47 }
 0x22f   :  { %v352_v60 = vsub.f32 %v962_v15, %v327_v54  ;;  %v335_v63 = vrot.slane %v306_v42, %v334_v57  ;;  %v353_v1 = vsub.f32 %v243_v24, %v331_v58  ;;  %v355_v17 = vsub.f32 %v245_v31, %v339_v6 }
 0x230   :  { %v356_v51 = vmul.f32 1.442695, %v348_v48  ;;  %v358_v52 = vmul.f32 1.442695, %v349_v49  ;;  %v360_v56 = vmul.f32 1.442695, %v350_v50 }
 0x231   :  { %v362_v61 = vmul.f32 1.442695, %v351_v55  ;;  %v364_v2 = vmul.f32 1.442695, %v352_v60  ;;  %v354_v14 = vsub.f32 %v972_v25, %v335_v63  ;;  %v366_v15 = vmul.f32 1.442695, %v353_v1 }
 0x232   :  { %750 = vpow2.f32 %v356_v51  ;;  %v370_v20 = vmul.f32 1.442695, %v355_v17 }
 0x233   :  { %752 = vpow2.f32 %v358_v52  ;;  %v368_v18 = vmul.f32 1.442695, %v354_v14 }
 0x234   :  { %754 = vpow2.f32 %v360_v56 }
 0x235   :  { %756 = vpow2.f32 %v362_v61 }
 0x236   :  { %758 = vpow2.f32 %v364_v2 }
 0x237   :  { %760 = vpow2.f32 %v366_v15 }
 0x238   :  { %762 = vpow2.f32 %v368_v18 }
 0x239   :  { %764 = vpow2.f32 %v370_v20 }
 0x23c   :  { %v751_v3 = vpop.eup %750 }
 0x23d   :  { %v753_v4 = vpop.eup %752  ;;  %381 = vperm.xlu1 %748, %v751_v3  }
 0x23e   :  { %384 = vperm.xlu0 %749, %v753_v4   ;;  %v755_v16 = vpop.eup %754 }
 0x23f   :  { %v757_v19 = vpop.eup %756 }
 0x240   :  { %v759_v21 = vpop.eup %758 }
 0x241   :  { %387 = vperm.xlu1 %748, %v755_v16   ;;  %v761_v22 = vpop.eup %760 }
 0x242   :  { %v763_v23 = vpop.eup %762 }
 0x243   :  { %v765_v24 = vpop.eup %764 }
 0x245   :  { %390 = vperm.xlu1 %748, %v757_v19  }
 0x249   :  { %393 = vperm.xlu1 %748, %v759_v21  }
 0x24d   :  { %396 = vperm.xlu1 %748, %v761_v22  }
 0x251   :  { %399 = vperm.xlu1 %748, %v763_v23  }
 0x255   :  { %402 = vperm.xlu1 %748, %v765_v24  }
 0x2bc   :  { %v382_v25 = vpop.permute.xlu1 %381 }
 0x2bd   :  { %v385_v29 = vpop.permute.xlu0 %384  ;;  %v407_v32 = vrot.slane %v382_v25, %v957_v0 }
 0x2be   :  { %v411_v31 = vrot.slane %v385_v29, %v957_v0 }
 0x2c0   :  { %v388_v26 = vpop.permute.xlu1 %387  ;;  %v436_v37 = vsel %vm288_vm2, %v411_v31, %v407_v32 }
 0x2c1   :  { %v415_v33 = vrot.slane %v388_v26, %v957_v0 }
 0x2c3   :  { %v437_v43 = vsel %vm290_vm3, %v415_v33, %v436_v37 }
 0x2c4   :  { %v391_v27 = vpop.permute.xlu1 %390 }
 0x2c5   :  { %v419_v34 = vrot.slane %v391_v27, %v957_v0 }
 0x2c7   :  { %v438_v45 = vsel %vm292_vm4, %v419_v34, %v437_v43 }
 0x2c8   :  { %v394_v28 = vpop.permute.xlu1 %393 }
 0x2c9   :  { %v423_v35 = vrot.slane %v394_v28, %v957_v0 }
 0x2cb   :  { %v439_v47 = vsel %vm294_vm5, %v423_v35, %v438_v45 }
 0x2cc   :  { %v397_v30 = vpop.permute.xlu1 %396 }
 0x2cd   :  { %v427_v42 = vrot.slane %v397_v30, %v957_v0 }
 0x2cf   :  { %v440_v49 = vsel %vm296_vm6, %v427_v42, %v439_v47 }
 0x2d0   :  { %v400_v36 = vpop.permute.xlu1 %399 }
 0x2d1   :  { %v431_v44 = vrot.slane %v400_v36, %v957_v0 }
 0x2d3   :  { %v441_v51 = vsel %vm298_vm7, %v431_v44, %v440_v49 }
 0x2d4   :  { %v403_v48 = vpop.permute.xlu1 %402 }
 0x2d5   :  { %v435_v50 = vrot.slane %v403_v48, %v957_v0 }
 0x2d7   :  { %v442_v52 = vsel %vm300_vm8, %v435_v50, %v441_v51 }
 0x2d8   :  { %v444_v54 = vsel %vm303_vm9, %v442_v52, 0.0 }
 0x2d9   :  { %445 = vadd.xlane.f32.xlu1 %v444_v54 }
 0x366   :  { %v446_v55 = vpop.xlane.xlu1 %445 }
 0x367   :  { %766 = vrcp.f32 %v446_v55 }
 0x371   :  { %v767_v56 = vpop.eup %766 }
 0x372   :  { %v452_v58 = vrot.slane %v767_v56, %v310_v38  ;;  %v456_v61 = vrot.slane %v767_v56, %v314_v39  ;;  %v460_v1 = vrot.slane %v767_v56, %v318_v40  ;;  %v464_v6 = vrot.slane %v767_v56, %v322_v41 }
 0x373   :  { %v468_v15 = vrot.slane %v767_v56, %v326_v46  ;;  %v472_v39 = vrot.slane %v767_v56, %v330_v53  ;;  %v476_v40 = vrot.slane %v767_v56, %v334_v57  ;;  %v480_v41 = vrot.slane %v767_v56, %v338_v62 }
 0x374   :  { %v489_v60 = vmul.f32 %v751_v3, %v452_v58  ;;  %v490_v63 = vmul.f32 %v753_v4, %v456_v61  ;;  %v491_v2 = vmul.f32 %v755_v16, %v460_v1  ;;  %v492_v14 = vmul.f32 %v757_v19, %v464_v6 }
 0x375   :  { %v493_v38 = vmul.f32 %v759_v21, %v468_v15  ;;  %v494_v3 = vmul.f32 %v761_v22, %v472_v39  ;;  %v495_v4 = vmul.f32 %v763_v23, %v476_v40  ;;  %v496_v16 = vmul.f32 %v765_v24, %v480_v41 }
 0x376   :  { %499 = vperm.xlu0 %749, %v489_v60  }
 0x37a   :  { %504 = vperm.xlu0 %749, %v490_v63  }
 0x37e   :  { %509 = vperm.xlu0 %749, %v491_v2  }
 0x382   :  { %514 = vperm.xlu0 %749, %v492_v14  }
 0x386   :  { %519 = vperm.xlu0 %749, %v493_v38  }
 0x38a   :  { %524 = vperm.xlu0 %749, %v494_v3  }
 0x38e   :  { %529 = vperm.xlu0 %749, %v495_v4  }
 0x392   :  { %534 = vperm.xlu0 %749, %v496_v16  }
 0x3f5   :  { %v500_v17 = vpop.permute.xlu0 %499 }
 0x3f6   :  { %v537_v19 = vmul.f32 %v500_v17, %v905_v5  ;;  %v621_v35 = vrot.slane %v500_v17, %v957_v0 }
 0x3f8   :  { %v545_v57 = vsel %vm58_vm0, %v537_v19, 0.0 }
 0x3f9   :  { %v505_v46 = vpop.permute.xlu0 %504  ;;  %v546_v24 = vrot.slane %v545_v57, 4 }
 0x3fa   :  { %v538_v18 = vmul.f32 %v505_v46, %v913_v8  ;;  %v625_v34 = vrot.slane %v505_v46, %v957_v0 }
 0x3fc   :  { %v552_v21 = vsel %vm58_vm0, %v538_v18, 0.0  ;;  %v650_v51 = vsel %vm288_vm2, %v625_v34, %v621_v35 }
 0x3fd   :  { %v510_v53 = vpop.permute.xlu0 %509  ;;  %v553_v23 = vrot.slane %v552_v21, 4 }
 0x3fe   :  { %v539_v20 = vmul.f32 %v510_v53, %v917_v10  ;;  %v547_v10 = vadd.f32 %v546_v24, %v545_v57  ;;  %v629_v37 = vrot.slane %v510_v53, %v957_v0 }
 0x3ff   :  { %v554_v28 = vadd.f32 %v553_v23, %v552_v21 }
 0x400   :  { %v559_v22 = vsel %vm58_vm0, %v539_v20, 0.0  ;;  %v548_v43 = vrot.slane %v547_v10, 2  ;;  %v651_v56 = vsel %vm290_vm3, %v629_v37, %v650_v51 }
 0x401   :  { %v515_v59 = vpop.permute.xlu0 %514  ;;  %v560_v25 = vrot.slane %v559_v22, 4  ;;  %v555_v36 = vrot.slane %v554_v28, 2 }
 0x402   :  { %v540_v62 = vmul.f32 %v515_v59, %v927_v12  ;;  %v633_v44 = vrot.slane %v515_v59, %v957_v0  ;;  %v549_v61 = vadd.f32 %v548_v43, %v547_v10 }
 0x403   :  { %v561_v29 = vadd.f32 %v560_v25, %v559_v22  ;;  %v556_v55 = vadd.f32 %v555_v36, %v554_v28 }
 0x404   :  { %v566_v26 = vsel %vm58_vm0, %v540_v62, 0.0  ;;  %v652_v1 = vsel %vm292_vm4, %v633_v44, %v651_v56  ;;  %v550_v20 = vrot.slane %v549_v61, 1 }
 0x405   :  { %v567_v8 = vrot.slane %v566_v26, 4  ;;  %v520_v27 = vpop.permute.xlu0 %519  ;;  %v557_v41 = vrot.slane %v556_v55, 1 }
 0x406   :  { %v541_v5 = vmul.f32 %v520_v27, %v909_v7  ;;  %v562_v7 = vrot.slane %v561_v29, 2  ;;  %v637_v48 = vrot.slane %v520_v27, %v957_v0 }
 0x407   :  { %v568_v31 = vadd.f32 %v567_v8, %v566_v26 }
 0x408   :  { %v573_v30 = vsel %vm58_vm0, %v541_v5, 0.0  ;;  %v563_v63 = vadd.f32 %v562_v7, %v561_v29  ;;  %v653_v14 = vsel %vm294_vm5, %v637_v48, %v652_v1 }
 0x409   :  { %v574_v32 = vrot.slane %v573_v30, 4  ;;  %v525_v33 = vpop.permute.xlu0 %524  ;;  %v569_v47 = vrot.slane %v568_v31, 2 }
 0x40a   :  { %v542_v12 = vmul.f32 %v525_v33, %v915_v9  ;;  %v641_v52 = vrot.slane %v525_v33, %v957_v0  ;;  %v564_v18 = vrot.slane %v563_v63, 1 }
 0x40b   :  { %v575_v42 = vadd.f32 %v574_v32, %v573_v30  ;;  %v570_v6 = vadd.f32 %v569_v47, %v568_v31 }
 0x40c   :  { %v580_v45 = vsel %vm58_vm0, %v542_v12, 0.0  ;;  %v654_v3 = vsel %vm296_vm6, %v641_v52, %v653_v14 }
 0x40d   :  { %v581_v49 = vrot.slane %v580_v45, 4  ;;  %v530_v50 = vpop.permute.xlu0 %529  ;;  %v576_v9 = vrot.slane %v575_v42, 2  ;;  %v571_v21 = vrot.slane %v570_v6, 1 }
 0x40e   :  { %v543_v54 = vmul.f32 %v530_v50, %v919_v11  ;;  %v645_v60 = vrot.slane %v530_v50, %v957_v0 }
 0x40f   :  { %v582_v58 = vadd.f32 %v581_v49, %v580_v45  ;;  %v577_v39 = vadd.f32 %v576_v9, %v575_v42 }
 0x410   :  { %v587_v2 = vsel %vm58_vm0, %v543_v54, 0.0  ;;  %v655_v46 = vsel %vm298_vm7, %v645_v60, %v654_v3 }
 0x411   :  { %v583_v15 = vrot.slane %v582_v58, 2  ;;  %v588_v38 = vrot.slane %v587_v2, 4  ;;  %v535_v11 = vpop.permute.xlu0 %534 }
 0x412   :  { %v544_v40 = vmul.f32 %v535_v11, %v931_v13  ;;  %v649_v4 = vrot.slane %v535_v11, %v957_v0  ;;  %v578_v13 = vrot.slane %v577_v39, 1 }
 0x413   :  { %v584_v16 = vadd.f32 %v583_v15, %v582_v58  ;;  %v589_v17 = vadd.f32 %v588_v38, %v587_v2 }
 0x414   :  { %v594_v19 = vsel %vm58_vm0, %v544_v40, 0.0  ;;  %v656_v53 = vsel %vm300_vm8, %v649_v4, %v655_v46 }
 0x415   :  { %v590_v57 = vrot.slane %v589_v17, 2  ;;  %v595_v22 = vrot.slane %v594_v19, 4  ;;  %658 = vst.msk [vmem:[#allocation7] sm:$0xff] %vm303_vm9, %v656_v53 }
 0x416   :  { %801 = shalt.err (!%p798_p12)
}
 0x417   :  { %s802_s25 = scalar_lea.hbm %s1113_s6, 128 }
 0x418   :  { %p803_p13 = scmp.ne.s32.totalorder %s1113_s6, %s802_s25  ;;  %p806_p0 = scmp.lt.u32.totalorder %s802_s25, %s1113_s6 }
 0x41a   :  { %p808_p1 = pnand %p806_p0, %p803_p13 }
 0x41c   :  { %811 = shalt.err (!%p808_p1)
}
 0x41d   :  { %678 = dma.vmem_to_hbm [thread:$0]  %s676_s21, 128, %s1113_s6, [#allocation8]   ;;  %v558_v0 = vadd.f32 %v557_v41, %v556_v55  ;;  %v585_v59 = vrot.slane %v584_v16, 1  ;;  %v591_v62 = vadd.f32 %v590_v57, %v589_v17  ;;  %v596_v23 = vadd.f32 %v595_v22, %v594_v19 }
 0x41e   :  { %v565_v24 = vadd.f32 %v564_v18, %v563_v63  ;;  %v551_v25 = vadd.f32 %v550_v20, %v549_v61  ;;  %v572_v26 = vadd.f32 %v571_v21, %v570_v6  ;;  %v579_v5 = vadd.f32 %v578_v13, %v577_v39  ;;  %s845_s6 = smov [#allocation6]  }
 0x41f   :  { %v592_v8 = vrot.slane %v591_v62, 1  ;;  %v597_v27 = vrot.slane %v596_v23, 2  ;;  %v586_v10 = vadd.f32 %v585_v59, %v584_v16  ;;  %s665_s8 = sshll.u32 %s845_s6, 4  ;;  %s666_s8 = int_to_ptr.vmem [resolvable:$true] %s665_s8 }
 0x420   :  { %v609_v28 = vsel %vm288_vm2, %v558_v0, %v551_v25  ;;  %s812_s9 = scalar_lea.vmem %s666_s8, 128  ;;  %p817_p3 = scmp.lt.s32.totalorder %s666_s8, %s666_s8 }
 0x421   :  { %v598_v29 = vadd.f32 %v597_v27, %v596_v23  ;;  %v610_v30 = vsel %vm290_vm3, %v565_v24, %v609_v28  ;;  %v593_v31 = vadd.f32 %v592_v8, %v591_v62  ;;  %p813_p2 = scmp.ne.s32.totalorder %s666_s8, %s812_s9  ;;  %p818_p4 = scmp.lt.s32.totalorder %s812_s9, %s812_s9 }
 0x422   :  { %v611_v33 = vsel %vm292_vm4, %v572_v26, %v610_v30 }
 0x423   :  { %v599_v32 = vrot.slane %v598_v29, 1  ;;  %v612_v34 = vsel %vm294_vm5, %v579_v5, %v611_v33  ;;  %p819_p5 = por %p818_p4, %p817_p3 }
 0x424   :  { %v613_v35 = vsel %vm296_vm6, %v586_v10, %v612_v34 }
 0x425   :  { %v600_v12 = vadd.f32 %v599_v32, %v598_v29  ;;  %v614_v36 = vsel %vm298_vm7, %v593_v31, %v613_v35  ;;  %p820_p6 = pnand %p819_p5, %p813_p2 }
 0x427   :  { %v615_v37 = vsel %vm300_vm8, %v600_v12, %v614_v36 }
 0x428   :  { %617 = vst.msk [vmem:[#allocation6] sm:$0xff] %vm58_vm0, %v615_v37 }
 0x429   :  { %823 = shalt.err (!%p820_p6)
}
 0x42a   :  { %s824_s12 = scalar_lea.hbm %s1112_s5, 128 }
 0x42b   :  { %p825_p7 = scmp.ne.s32.totalorder %s1112_s5, %s824_s12  ;;  %p828_p8 = scmp.lt.u32.totalorder %s824_s12, %s1112_s5 }
 0x42d   :  { %p830_p9 = pnand %p828_p8, %p825_p7 }
 0x42f   :  { %833 = shalt.err (!%p830_p9)
}
 0x430   :  { %668 = dma.vmem_to_hbm [thread:$0]  %s666_s8, 128, %s1112_s5, [#allocation5]  }
 0x431   :  { %836 = dma.done.wait [#allocation5], 128  }
 0x432   :  { %837 = vsyncadd [#allocation5], 4294967168 }
 0x433   :  { %838 = dma.done.wait [#allocation8], 128  }
 0x434   :  { %839 = vsyncadd [#allocation8], 4294967168 }
 0x435   :  { %685 = vsyncpa [#allocation4], 1 }
 0x436   :  { %686 = vsyncpa [#allocation5], 1 }
 0x437   :  { %687 = vsyncpa [#allocation8], 1 }

</bundles_post_ra>
